<compile_context>
chip_gen: v5e
topology: v5e:2x2
jax: 0.10.0
libtpu: 0.0.40
codegen_flags: <defaults>
</compile_context>

<pallas_src>
import jax
import jax.numpy as jnp
from jax.experimental import pallas as pl
from jax.experimental.pallas import tpu as pltpu


def _pick_tile(dim, candidates):
    """Largest candidate that divides `dim`, else the full dim."""
    for c in candidates:
        if dim % c == 0:
            return c
    return dim


def simclr_projector_kernel(x_ref, w1_ref, b1_ref, w2_ref, o_ref):
    k = pl.program_id(1)  # hidden-tile (reduction) index

    # Output block is resident across the reduction axis: use it directly as
    # the accumulator (second linear has no bias, so init with zeros).
    @pl.when(k == 0)
    def _():
        o_ref[...] = jnp.zeros_like(o_ref)

    # First linear, one hidden tile: MXU in bf16 with f32 accumulation.
    x = x_ref[...].astype(jnp.bfloat16)                                  # (TB, D)
    h = jnp.dot(x, w1_ref[...], preferred_element_type=jnp.float32)      # (TB, TH) f32
    h = h + b1_ref[...]                                                  # bias add in f32 (VPU)

    # ReLU in f32.
    r = jnp.maximum(h, 0.0)

    # Second linear (bias=False): accumulate partial products over hidden
    # tiles directly into the resident output block.
    o_ref[...] += jnp.dot(r.astype(jnp.bfloat16), w2_ref[...],
                          preferred_element_type=jnp.float32)


def prepare_params(params, tile_h=None):
    """One-time parameter prep: pick tile_h and pre-block W1 so each hidden
    tile is contiguous in HBM.  (Done at load time, not in the forward path.)"""
    w1, b1, w2 = params["w1"], params["b1"], params["w2"]
    D, H = w1.shape
    if tile_h is None:
        tile_h = _pick_tile(H, (1024, 512, 256, 128))
    assert H % tile_h == 0, "hidden dim must be divisible by tile_h"
    n_h = H // tile_h
    w1_blk = w1.reshape(D, n_h, tile_h).transpose(1, 0, 2)   # (nH, D, TH) contiguous tiles
    return {"w1_blk": w1_blk, "b1": b1, "w2": w2}


def simclr_projector(x, prepped, *, tile_b=None):
    """x: (B, input_dim) float32.  Returns (B, out_dim) float32."""
    w1_blk, b1, w2 = prepped["w1_blk"], prepped["b1"], prepped["w2"]
    B, D = x.shape
    n_h, _, tile_h = w1_blk.shape
    O = w2.shape[1]

    if tile_b is None:
        tile_b = _pick_tile(B, (512, 256, 128, 64, 32, 16, 8))
    assert B % tile_b == 0, "batch must be divisible by tile_b"
    n_b = B // tile_b

    return pl.pallas_call(
        simclr_projector_kernel,
        out_shape=jax.ShapeDtypeStruct((B, O), jnp.float32),
        grid_spec=pltpu.PrefetchScalarGridSpec(
            num_scalar_prefetch=0,
            grid=(n_b, n_h),                                                   # reduction axis LAST
            in_specs=[
                pl.BlockSpec((tile_b, D), lambda i, k: (i, 0)),                # x batch tile
                pl.BlockSpec((pl.Squeezed(), D, tile_h), lambda i, k: (k, 0, 0)),  # W1 tile (contiguous)
                pl.BlockSpec((1, tile_h), lambda i, k: (0, k)),                # b1 tile
                pl.BlockSpec((tile_h, O), lambda i, k: (k, 0)),                # W2 tile
            ],
            out_specs=pl.BlockSpec((tile_b, O), lambda i, k: (i, 0)),          # resident accumulator
        ),
        compiler_params=pltpu.CompilerParams(
            dimension_semantics=("parallel", "arbitrary")),
    )(x, w1_blk, b1, w2)


def init_params(key, input_dim, out_dim=128):
    """PyTorch-like uniform(-1/sqrt(fan_in), 1/sqrt(fan_in)) init.

    Weights are stored pre-transposed (in, out) and cast to bf16 for the MXU;
    the bias stays f32 (it is consumed by the f32 VPU path)."""
    k1, k2, k3 = jax.random.split(key, 3)
    s1 = 1.0 / jnp.sqrt(input_dim)
    s2 = 1.0 / jnp.sqrt(input_dim)
    return {
        "w1": jax.random.uniform(k1, (input_dim, input_dim), jnp.float32, -s1, s1
                                 ).astype(jnp.bfloat16),
        "b1": jax.random.uniform(k2, (1, input_dim), jnp.float32, -s1, s1),
        # Second linear has bias=False in SimCLRProjector.
        "w2": jax.random.uniform(k3, (input_dim, out_dim), jnp.float32, -s2, s2
                                 ).astype(jnp.bfloat16),
    }


def reference(x, p):
    """Pure-JAX reference using the same (bf16-stored) weights in f32 math."""
    w1 = p["w1"].astype(jnp.float32)
    w2 = p["w2"].astype(jnp.float32)
    h = x @ w1 + p["b1"]
    r = jnp.maximum(h, 0.0)
    return r @ w2


if __name__ == "__main__":
    key = jax.random.PRNGKey(0)
    kx, kp = jax.random.split(key)

    B, input_dim, out_dim = 8, 256, 128
    x = jax.random.normal(kx, (B, input_dim), jnp.float32)
    params = init_params(kp, input_dim, out_dim=out_dim)
    prepped = prepare_params(params)           # one-time weight blocking

    z = simclr_projector(x, prepped)
    z = jax.block_until_ready(z)

    z_ref = reference(x, params)
    assert z.shape == (B, out_dim)
    # bf16 matmul operands -> loosen tolerance vs the f32 reference.
    assert jnp.allclose(z, z_ref, atol=2e-2, rtol=2e-2), "mismatch vs reference"

    print("KERNEL_OK")
</pallas_src>

<mosaic_0001>
module attributes {stable_mosaic.version = 11 : i64} {
  func.func @simclr_projector_kernel(%arg0: i32, %arg1: i32, %arg2: memref<8x256xf32, #tpu.memory_space<vmem>>, %arg3: memref<1x256x256xbf16, #tpu.memory_space<vmem>>, %arg4: memref<1x256xf32, #tpu.memory_space<vmem>>, %arg5: memref<256x128xbf16, #tpu.memory_space<vmem>>, %arg6: memref<8x128xf32, #tpu.memory_space<vmem>>) attributes {dimension_semantics = [#tpu.dimension_semantics<parallel>, #tpu.dimension_semantics<arbitrary>], iteration_bounds = array<i64: 1, 1>, scalar_prefetch = 0 : i64, scratch_operands = 0 : i64, tpu.core_type = #tpu.core_type<tc>, window_params = [{transform_indices = @transform_0, window_bounds = array<i64: 8, 256>}, {transform_indices = @transform_1, window_bounds = array<i64: 1, 256, 256>}, {transform_indices = @transform_2, window_bounds = array<i64: 1, 256>}, {transform_indices = @transform_3, window_bounds = array<i64: 256, 128>}, {transform_indices = @transform_4, window_bounds = array<i64: 8, 128>}]} {
    %c0_i32 = arith.constant 0 : i32
    %0 = arith.cmpi eq, %arg1, %c0_i32 : i32
    %1 = arith.extui %0 : i1 to i32
    %c0_i32_0 = arith.constant 0 : i32
    %2 = arith.cmpi ne, %1, %c0_i32_0 : i32
    scf.if %2 {
      %cst_15 = arith.constant 0.000000e+00 : f32
      %19 = vector.broadcast %cst_15 : f32 to vector<8x128xf32>
      %c0_16 = arith.constant 0 : index
      %c0_17 = arith.constant 0 : index
      %20 = vector.load %arg6[%c0_16, %c0_17] : memref<8x128xf32, #tpu.memory_space<vmem>>, vector<8x128xf32>
      tpu.vector_store %arg6[%c0_16, %c0_17], %19 {strides = array<i32>} : memref<8x128xf32, #tpu.memory_space<vmem>>, vector<8x128xf32>,
    } else {
    }
    %c0 = arith.constant 0 : index
    %c0_1 = arith.constant 0 : index
    %3 = vector.load %arg2[%c0, %c0_1] : memref<8x256xf32, #tpu.memory_space<vmem>>, vector<8x256xf32>
    %4 = arith.truncf %3 : vector<8x256xf32> to vector<8x256xbf16>
    %c0_2 = arith.constant 0 : index
    %c0_3 = arith.constant 0 : index
    %c0_4 = arith.constant 0 : index
    %5 = vector.load %arg3[%c0_2, %c0_3, %c0_4] : memref<1x256x256xbf16, #tpu.memory_space<vmem>>, vector<1x256x256xbf16>
    %6 = vector.shape_cast %5 : vector<1x256x256xbf16> to vector<256x256xbf16>
    %cst = arith.constant dense<0.000000e+00> : vector<8x256xf32>
    %7 = tpu.matmul %4, %6, %cst {dimension_numbers = #tpu.dot_dimension_numbers<[1], [0], [0], [1], [0, 0, 1, 1], [], []>} : vector<8x256xbf16>, vector<256x256xbf16>, vector<8x256xf32> -> vector<8x256xf32>
    %c0_5 = arith.constant 0 : index
    %c0_6 = arith.constant 0 : index
    %8 = vector.load %arg4[%c0_5, %c0_6] : memref<1x256xf32, #tpu.memory_space<vmem>>, vector<1x256xf32>
    %9 = vector.broadcast %8 : vector<1x256xf32> to vector<8x256xf32>
    %10 = arith.addf %7, %9 : vector<8x256xf32>
    %cst_7 = arith.constant 0.000000e+00 : f32
    %11 = vector.broadcast %cst_7 : f32 to vector<8x256xf32>
    %12 = arith.maximumf %10, %11 : vector<8x256xf32>
    %c0_8 = arith.constant 0 : index
    %c0_9 = arith.constant 0 : index
    %13 = vector.load %arg6[%c0_8, %c0_9] : memref<8x128xf32, #tpu.memory_space<vmem>>, vector<8x128xf32>
    %14 = arith.truncf %12 : vector<8x256xf32> to vector<8x256xbf16>
    %c0_10 = arith.constant 0 : index
    %c0_11 = arith.constant 0 : index
    %15 = vector.load %arg5[%c0_10, %c0_11] : memref<256x128xbf16, #tpu.memory_space<vmem>>, vector<256x128xbf16>
    %cst_12 = arith.constant dense<0.000000e+00> : vector<8x128xf32>
    %16 = tpu.matmul %14, %15, %cst_12 {dimension_numbers = #tpu.dot_dimension_numbers<[1], [0], [0], [1], [0, 0, 1, 1], [], []>} : vector<8x256xbf16>, vector<256x128xbf16>, vector<8x128xf32> -> vector<8x128xf32>
    %17 = arith.addf %13, %16 : vector<8x128xf32>
    %c0_13 = arith.constant 0 : index
    %c0_14 = arith.constant 0 : index
    %18 = vector.load %arg6[%c0_13, %c0_14] : memref<8x128xf32, #tpu.memory_space<vmem>>, vector<8x128xf32>
    tpu.vector_store %arg6[%c0_13, %c0_14], %17 {strides = array<i32>} : memref<8x128xf32, #tpu.memory_space<vmem>>, vector<8x128xf32>,
    return
  }
  func.func @transform_0(%arg0: i32, %arg1: i32) -> (i32, i32) {
    %c0_i32 = arith.constant 0 : i32
    %c0_i32_0 = arith.constant 0 : i32
    return %arg0, %c0_i32 : i32, i32
  }
  func.func @transform_1(%arg0: i32, %arg1: i32) -> (i32, i32, i32) {
    %c0_i32 = arith.constant 0 : i32
    %c0_i32_0 = arith.constant 0 : i32
    %c0_i32_1 = arith.constant 0 : i32
    return %arg1, %c0_i32, %c0_i32_0 : i32, i32, i32
  }
  func.func @transform_2(%arg0: i32, %arg1: i32) -> (i32, i32) {
    %c0_i32 = arith.constant 0 : i32
    %c0_i32_0 = arith.constant 0 : i32
    return %c0_i32, %arg1 : i32, i32
  }
  func.func @transform_3(%arg0: i32, %arg1: i32) -> (i32, i32) {
    %c0_i32 = arith.constant 0 : i32
    %c0_i32_0 = arith.constant 0 : i32
    return %arg1, %c0_i32 : i32, i32
  }
  func.func @transform_4(%arg0: i32, %arg1: i32) -> (i32, i32) {
    %c0_i32 = arith.constant 0 : i32
    %c0_i32_0 = arith.constant 0 : i32
    return %arg0, %c0_i32 : i32, i32
  }
}

</mosaic_0001>

<bundles_post_ra>
// kernel: tpu_custom_call.1
= control target key start
LH: loop header
LB: loop body
LE: loop exit
PB: predicated region body
PF: predicated region fallthrough
CT: control target
= control target key end

     0   :  { %9 = vsyncpa [#allocation3], 0  ;;  %s943_s0 = inlined_call_operand.hbm [shape: f32[8,256], index: 0, kind: input, shape index: {}]   ;;  %s944_s1 = inlined_call_operand.hbm [shape: bf16[1,256,256], index: 1, kind: input, shape index: {}]   ;;  %s945_s2 = inlined_call_operand.hbm [shape: f32[1,256], index: 2, kind: input, shape index: {}]   ;;  %s946_s3 = inlined_call_operand.hbm [shape: bf16[256,128], index: 3, kind: input, shape index: {}]   ;;  %s947_s4 = inlined_call_operand.hbm [shape: f32[8,128], index: 4, kind: output, shape index: {}]  }
   0x1   :  { %10 = vsyncpa [#allocation6], 0 }
   0x2   :  { %11 = vsyncpa [#allocation9], 0  ;;  %s28_s17 = sshll.u32 %s944_s1, 4  ;;  %s29_s17 = int_to_ptr.hbm [resolvable:$true] %s28_s17 }
   0x3   :  { %12 = vsyncpa [#allocation4], 0  ;;  %s894_s18 = smov [#allocation5]   ;;  %s18_s22 = sshll.u32 %s943_s0, 4  ;;  %s19_s22 = int_to_ptr.hbm [resolvable:$true] %s18_s22 }
   0x4   :  { %s30_s19 = sshll.u32 %s894_s18, 4  ;;  %s895_s23 = smov 128   ;;  %s31_s19 = int_to_ptr.vmem [resolvable:$true] %s30_s19 }
   0x5   :  { %s896_s24 = smov 8   ;;  %s897_s25 = smov [#allocation2]  }
   0x6   :  { %36 = dma.hbm_to_vmem [thread:$0]  %s29_s17, 4096, %s31_s19, [#allocation6], %s895_s23, %s895_s23, %s896_s24  }
   0x7   :  { %s20_s26 = sshll.u32 %s897_s25, 4  ;;  %s42_s29 = sshll.u32 %s945_s2, 4  ;;  %s21_s26 = int_to_ptr.vmem [resolvable:$true] %s20_s26  ;;  %s43_s29 = int_to_ptr.hbm [resolvable:$true] %s42_s29 }
   0x8   :  { %23 = dma.hbm_to_vmem [thread:$0]  %s19_s22, 256, %s21_s26, [#allocation3]  }
   0x9   :  { %s52_s5 = sshll.u32 %s946_s3, 4  ;;  %s898_s6 = smov [#allocation7]   ;;  %s53_s5 = int_to_ptr.hbm [resolvable:$true] %s52_s5 }
   0xa   :  { %s44_s7 = sshll.u32 %s898_s6, 4  ;;  %s899_s0 = smov [#allocation8]   ;;  %s45_s7 = int_to_ptr.vmem [resolvable:$true] %s44_s7 }
   0xb   :  { %47 = dma.hbm_to_vmem [thread:$0]  %s43_s29, 32, %s45_s7, [#allocation6]  }
   0xc   :  { %s54_s8 = sshll.u32 %s899_s0, 4  ;;  %s900_s9 = smov 64   ;;  %s55_s8 = int_to_ptr.vmem [resolvable:$true] %s54_s8 }
   0xd   :  { %s901_s10 = smov 4  }
   0xe   :  { %60 = dma.hbm_to_vmem [thread:$0]  %s53_s5, 2048, %s55_s8, [#allocation9], %s900_s9, %s900_s9, %s901_s10  }
   0xf   :  { %886 = dma.done.wait [#allocation3], 256  }
  0x10   :  { %887 = vsyncadd [#allocation3], 4294967040 }
  0x11   :  { %888 = dma.done.wait [#allocation6], 4128  }
  0x12   :  { %889 = vsyncadd [#allocation6], 4294963168 }
  0x13   :  { %890 = dma.done.wait [#allocation9], 2048  }
  0x14   :  { %891 = vsyncadd [#allocation9], 4294965248  ;;  %v574_v0 = vld [vmem:[#allocation5 + $0x70] sm:$0xf]  ;;  %v723_v1 = vld [vmem:[#allocation5 + $0x74] sm:$0xf0] }
  0x15   :  { %v638_v2 = vld [vmem:[#allocation5 + $0xf0] sm:$0xf]  ;;  %v575_v3 = vor.u32 %v723_v1, %v574_v0  ;;  %v739_v4 = vld [vmem:[#allocation5 + $0xf4] sm:$0xf0]  ;;  %v722_v5 = vld [vmem:[#allocation5 + $0x74] sm:$0xf] }
  0x16   :  { %v576_v6 = vld [vmem:[#allocation5 + $0x78] sm:$0xf0]  ;;  %v639_v7 = vor.u32 %v739_v4, %v638_v2  ;;  %v738_v9 = vld [vmem:[#allocation5 + $0xf4] sm:$0xf]  ;;  %v566_v11 = vld [vmem:[#allocation5 + $0x60] sm:$0xf] }
  0x17   :  { %v579_v8 = vor.u32 %v722_v5, %v576_v6  ;;  %v640_v10 = vld [vmem:[#allocation5 + $0xf8] sm:$0xf0]  ;;  %284 = vmatpush.bf16.msra.mxu0 %v575_v3  ;;  %v721_v13 = vld [vmem:[#allocation5 + $0x64] sm:$0xf0]  ;;  %v630_v14 = vld [vmem:[#allocation5 + $0xe0] sm:$0xf] }
  0x18   :  { %v643_v12 = vor.u32 %v738_v9, %v640_v10  ;;  %v737_v15 = vld [vmem:[#allocation5 + $0xe4] sm:$0xf0]  ;;  %297 = vmatpush.bf16.msra.mxu1 %v639_v7  ;;  %v567_v16 = vor.u32 %v721_v13, %v566_v11  ;;  %v720_v18 = vld [vmem:[#allocation5 + $0x64] sm:$0xf]  ;;  %v568_v19 = vld [vmem:[#allocation5 + $0x68] sm:$0xf0] }
  0x19   :  { %310 = vmatpush.bf16.msra.mxu2 %v579_v8  ;;  %v631_v17 = vor.u32 %v737_v15, %v630_v14  ;;  %v736_v20 = vld [vmem:[#allocation5 + $0xe4] sm:$0xf]  ;;  %v571_v21 = vor.u32 %v720_v18, %v568_v19  ;;  %v632_v22 = vld [vmem:[#allocation5 + $0xe8] sm:$0xf0]  ;;  %v558_v23 = vld [vmem:[#allocation5 + $0x50] sm:$0xf] }
  0x1a   :  { %323 = vmatpush.bf16.msra.mxu3 %v643_v12  ;;  %v719_v24 = vld [vmem:[#allocation5 + $0x54] sm:$0xf0]  ;;  %v635_v25 = vor.u32 %v736_v20, %v632_v22  ;;  %v622_v26 = vld [vmem:[#allocation5 + $0xd0] sm:$0xf]  ;;  %v718_v28 = vld [vmem:[#allocation5 + $0x54] sm:$0xf] }
  0x1b   :  { %v735_v27 = vld [vmem:[#allocation5 + $0xd4] sm:$0xf0]  ;;  %285 = vmatpush.bf16.msra.mxu0 %v567_v16  ;;  %v559_v29 = vor.u32 %v719_v24, %v558_v23  ;;  %v560_v30 = vld [vmem:[#allocation5 + $0x58] sm:$0xf0]  ;;  %v734_v31 = vld [vmem:[#allocation5 + $0xd4] sm:$0xf] }
  0x1c   :  { %v624_v32 = vld [vmem:[#allocation5 + $0xd8] sm:$0xf0]  ;;  %298 = vmatpush.bf16.msra.mxu1 %v631_v17  ;;  %v623_v33 = vor.u32 %v735_v27, %v622_v26  ;;  %v563_v34 = vor.u32 %v718_v28, %v560_v30  ;;  %v550_v35 = vld [vmem:[#allocation5 + $0x40] sm:$0xf]  ;;  %v717_v36 = vld [vmem:[#allocation5 + $0x44] sm:$0xf0] }
  0x1d   :  { %311 = vmatpush.bf16.msra.mxu2 %v571_v21  ;;  %v614_v37 = vld [vmem:[#allocation5 + $0xc0] sm:$0xf]  ;;  %v627_v38 = vor.u32 %v734_v31, %v624_v32  ;;  %v733_v39 = vld [vmem:[#allocation5 + $0xc4] sm:$0xf0]  ;;  %v716_v40 = vld [vmem:[#allocation5 + $0x44] sm:$0xf]  ;;  %v551_v44 = vor.u32 %v717_v36, %v550_v35 }
  0x1e   :  { %324 = vmatpush.bf16.msra.mxu3 %v635_v25  ;;  %v552_v41 = vld [vmem:[#allocation5 + $0x48] sm:$0xf0]  ;;  %v732_v42 = vld [vmem:[#allocation5 + $0xc4] sm:$0xf]  ;;  %v615_v45 = vor.u32 %v733_v39, %v614_v37  ;;  %v542_v47 = vld [vmem:[#allocation5 + $0x30] sm:$0xf] }
  0x1f   :  { %v616_v43 = vld [vmem:[#allocation5 + $0xc8] sm:$0xf0]  ;;  %286 = vmatpush.bf16.msra.mxu0 %v559_v29  ;;  %v555_v46 = vor.u32 %v716_v40, %v552_v41  ;;  %v715_v48 = vld [vmem:[#allocation5 + $0x34] sm:$0xf0]  ;;  %v606_v49 = vld [vmem:[#allocation5 + $0xb0] sm:$0xf] }
  0x20   :  { %299 = vmatpush.bf16.msra.mxu1 %v623_v33  ;;  %v619_v50 = vor.u32 %v732_v42, %v616_v43  ;;  %v731_v51 = vld [vmem:[#allocation5 + $0xb4] sm:$0xf0]  ;;  %v714_v52 = vld [vmem:[#allocation5 + $0x34] sm:$0xf]  ;;  %v544_v53 = vld [vmem:[#allocation5 + $0x38] sm:$0xf0]  ;;  %v543_v56 = vor.u32 %v715_v48, %v542_v47 }
  0x21   :  { %312 = vmatpush.bf16.msra.mxu2 %v563_v34  ;;  %v730_v54 = vld [vmem:[#allocation5 + $0xb4] sm:$0xf]  ;;  %v608_v55 = vld [vmem:[#allocation5 + $0xb8] sm:$0xf0]  ;;  %v607_v57 = vor.u32 %v731_v51, %v606_v49  ;;  %v547_v58 = vor.u32 %v714_v52, %v544_v53  ;;  %v534_v59 = vld [vmem:[#allocation5 + $0x20] sm:$0xf] }
  0x22   :  { %325 = vmatpush.bf16.msra.mxu3 %v627_v38  ;;  %v713_v60 = vld [vmem:[#allocation5 + $0x24] sm:$0xf0]  ;;  %v598_v61 = vld [vmem:[#allocation5 + $0xa0] sm:$0xf]  ;;  %v611_v62 = vor.u32 %v730_v54, %v608_v55  ;;  %v712_v0 = vld [vmem:[#allocation5 + $0x24] sm:$0xf] }
  0x23   :  { %287 = vmatpush.bf16.msra.mxu0 %v551_v44  ;;  %v729_v63 = vld [vmem:[#allocation5 + $0xa4] sm:$0xf0]  ;;  %v536_v1 = vld [vmem:[#allocation5 + $0x28] sm:$0xf0]  ;;  %v728_v2 = vld [vmem:[#allocation5 + $0xa4] sm:$0xf]  ;;  %v535_v4 = vor.u32 %v713_v60, %v534_v59 }
  0x24   :  { %300 = vmatpush.bf16.msra.mxu1 %v615_v45  ;;  %v600_v3 = vld [vmem:[#allocation5 + $0xa8] sm:$0xf0]  ;;  %v599_v5 = vor.u32 %v729_v63, %v598_v61  ;;  %v539_v6 = vor.u32 %v712_v0, %v536_v1  ;;  %v526_v7 = vld [vmem:[#allocation5 + $0x10] sm:$0xf]  ;;  %v711_v8 = vld [vmem:[#allocation5 + $0x14] sm:$0xf0] }
  0x25   :  { %313 = vmatpush.bf16.msra.mxu2 %v555_v46  ;;  %v590_v9 = vld [vmem:[#allocation5 + $0x90] sm:$0xf]  ;;  %v603_v10 = vor.u32 %v728_v2, %v600_v3  ;;  %v727_v11 = vld [vmem:[#allocation5 + $0x94] sm:$0xf0]  ;;  %v710_v12 = vld [vmem:[#allocation5 + $0x14] sm:$0xf]  ;;  %v527_v16 = vor.u32 %v711_v8, %v526_v7 }
  0x26   :  { %326 = vmatpush.bf16.msra.mxu3 %v619_v50  ;;  %v528_v13 = vld [vmem:[#allocation5 + $0x18] sm:$0xf0]  ;;  %v726_v14 = vld [vmem:[#allocation5 + $0x94] sm:$0xf]  ;;  %v591_v17 = vor.u32 %v727_v11, %v590_v9  ;;  %v518_v19 = vld [vmem:[#allocation5] sm:$0xf] }
  0x27   :  { %288 = vmatpush.bf16.msra.mxu0 %v543_v56  ;;  %v592_v15 = vld [vmem:[#allocation5 + $0x98] sm:$0xf0]  ;;  %v531_v18 = vor.u32 %v710_v12, %v528_v13  ;;  %v709_v20 = vld [vmem:[#allocation5 + $0x4] sm:$0xf0]  ;;  %v582_v21 = vld [vmem:[#allocation5 + $0x80] sm:$0xf] }
  0x28   :  { %301 = vmatpush.bf16.msra.mxu1 %v607_v57  ;;  %v595_v22 = vor.u32 %v726_v14, %v592_v15  ;;  %v725_v23 = vld [vmem:[#allocation5 + $0x84] sm:$0xf0]  ;;  %v708_v24 = vld [vmem:[#allocation5 + $0x4] sm:$0xf]  ;;  %v520_v25 = vld [vmem:[#allocation5 + $0x8] sm:$0xf0]  ;;  %v519_v28 = vor.u32 %v709_v20, %v518_v19 }
  0x29   :  { %314 = vmatpush.bf16.msra.mxu2 %v547_v58  ;;  %v724_v26 = vld [vmem:[#allocation5 + $0x84] sm:$0xf]  ;;  %v584_v27 = vld [vmem:[#allocation5 + $0x88] sm:$0xf0]  ;;  %v82_v29 = vld [vmem:[#allocation2] sm:$0xff]  ;;  %v583_v30 = vor.u32 %v725_v23, %v582_v21  ;;  %v523_v31 = vor.u32 %v708_v24, %v520_v25  ;;  %s902_s2 = smov [#allocation10]  }
  0x2a   :  { %327 = vmatpush.bf16.msra.mxu3 %v611_v62  ;;  %v83_v32 = vld [vmem:[#allocation2 + $0x8] sm:$0xff]  ;;  %v587_v33 = vor.u32 %v724_v26, %v584_v27  ;;  %v84_v35 = vpack.c.bf16 %v82_v29, %v82_v29  ;;  %v745_v40 = vld [vmem:[#allocation8 + $0x28] sm:$0xff]  ;;  %v744_v42 = vld [vmem:[#allocation8 + $0x20] sm:$0xff]  ;;  %s502_s3 = sshll.u32 %s902_s2, 4  ;;  %s504_s13 = sshll.u32 %s947_s4, 4  ;;  %s503_s3 = int_to_ptr.vmem [resolvable:$true] %s502_s3  ;;  %s505_s13 = int_to_ptr.hbm [resolvable:$true] %s504_s13 }
  0x2b   :  { %289 = vmatpush.bf16.msra.mxu0 %v535_v4  ;;  %v747_v34 = vld [vmem:[#allocation8 + $0x38] sm:$0xff]  ;;  %v85_v37 = vpack.c.bf16 %v83_v32, %v83_v32  ;;  %v746_v38 = vld [vmem:[#allocation8 + $0x30] sm:$0xff]  ;;  %v753_v41 = vld [vmem:[#allocation8 + $0x68] sm:$0xff] }
  0x2c   :  { %302 = vmatpush.bf16.msra.mxu1 %v599_v5  ;;  %v755_v36 = vld [vmem:[#allocation8 + $0x78] sm:$0xff]  ;;  %v754_v39 = vld [vmem:[#allocation8 + $0x70] sm:$0xff]  ;;  %v752_v43 = vld [vmem:[#allocation8 + $0x60] sm:$0xff] }
  0x2d   :  { %315 = vmatpush.bf16.msra.mxu2 %v539_v6  ;;  %v743_v44 = vld [vmem:[#allocation8 + $0x18] sm:$0xff]  ;;  %v742_v45 = vld [vmem:[#allocation8 + $0x10] sm:$0xff]  ;;  %v741_v47 = vld [vmem:[#allocation8 + $0x8] sm:$0xff] }
  0x2e   :  { %328 = vmatpush.bf16.msra.mxu3 %v603_v10  ;;  %v751_v46 = vld [vmem:[#allocation8 + $0x58] sm:$0xff]  ;;  %v750_v48 = vld [vmem:[#allocation8 + $0x50] sm:$0xff]  ;;  %v740_v49 = vld [vmem:[#allocation8] sm:$0xff] }
  0x2f   :  { %290 = vmatpush.bf16.msra.mxu0 %v527_v16  ;;  %v749_v50 = vld [vmem:[#allocation8 + $0x48] sm:$0xff]  ;;  %v748_v51 = vld [vmem:[#allocation8 + $0x40] sm:$0xff]  ;;  %v118_v52 = vld [vmem:[#allocation7] sm:$0x3] }
  0x30   :  { %303 = vmatpush.bf16.msra.mxu1 %v591_v17  ;;  %v120_v53 = vperm.slane %v118_v52, 0  ;;  %v121_v58 = vperm.slane %v118_v52, 1 }
  0x31   :  { %316 = vmatpush.bf16.msra.mxu2 %v531_v18 }
  0x32   :  { %329 = vmatpush.bf16.msra.mxu3 %v595_v22 }
  0x33   :  { %291 = vmatpush.bf16.msra.mxu0 %v519_v28 }
  0x34   :  { %304 = vmatpush.bf16.msra.mxu1 %v583_v30 }
  0x35   :  { %317 = vmatpush.bf16.msra.mxu2 %v523_v31 }
  0x36   :  { %330 = vmatpush.bf16.msra.mxu3 %v587_v33  ;;  %292 = vmatmul.bf16.vlgmr.msra.gmra.mxu0 %v84_v35 }
  0x37   :  { %469 = vmatpush.bf16.msrb.mxu0 %v747_v34  ;;  %305 = vmatmul.bf16.vlgmr.msra.gmra.mxu1 %v85_v37 }
  0x38   :  { %482 = vmatpush.bf16.msrb.mxu1 %v755_v36  ;;  %318 = vmatmul.bf16.vlgmr.msra.gmra.mxu2 %v84_v35 }
  0x39   :  { %331 = vmatmul.bf16.vlgmr.msra.gmra.mxu3 %v85_v37 }
  0x3b   :  { %470 = vmatpush.bf16.msrb.mxu0 %v746_v38 }
  0x3c   :  { %483 = vmatpush.bf16.msrb.mxu1 %v754_v39 }
  0x3f   :  { %471 = vmatpush.bf16.msrb.mxu0 %v745_v40 }
  0x40   :  { %484 = vmatpush.bf16.msrb.mxu1 %v753_v41 }
  0x43   :  { %472 = vmatpush.bf16.msrb.mxu0 %v744_v42 }
  0x44   :  { %485 = vmatpush.bf16.msrb.mxu1 %v752_v43 }
  0x47   :  { %473 = vmatpush.bf16.msrb.mxu0 %v743_v44 }
  0x48   :  { %486 = vmatpush.bf16.msrb.mxu1 %v751_v46 }
  0x4b   :  { %474 = vmatpush.bf16.msrb.mxu0 %v742_v45 }
  0x4c   :  { %487 = vmatpush.bf16.msrb.mxu1 %v750_v48 }
  0x4f   :  { %475 = vmatpush.bf16.msrb.mxu0 %v741_v47 }
  0x50   :  { %488 = vmatpush.bf16.msrb.mxu1 %v749_v50 }
  0x53   :  { %476 = vmatpush.bf16.msrb.mxu0 %v740_v49 }
  0x54   :  { %489 = vmatpush.bf16.msrb.mxu1 %v748_v51 }
  0xb3   :  { %v293_v54 = vpop.f32.mrf.mxu0 }
  0xb4   :  { %v294_v55 = vadd.f32 %v293_v54, %v120_v53  ;;  %v306_v56 = vpop.f32.mrf.mxu1 }
  0xb6   :  { %v307_v57 = vadd.f32 %v306_v56, %v294_v55 }
  0xb8   :  { %v336_v59 = vmax.f32 %v307_v57, 0.0 }
  0xba   :  { %v339_v60 = vpack.c.bf16 %v336_v59, %v336_v59 }
  0xbb   :  { %v319_v61 = vpop.f32.mrf.mxu2  ;;  %v295_v0 = vpop.f32.mrf.mxu0 }
  0xbc   :  { %v320_v62 = vadd.f32 %v319_v61, %v121_v58  ;;  %v332_v63 = vpop.f32.mrf.mxu3  ;;  %v308_v1 = vpop.f32.mrf.mxu1  ;;  %477 = vmatmul.bf16.vlgmr.msrb.gmra.mxu0 %v339_v60 }
  0xbe   :  { %v333_v2 = vadd.f32 %v332_v63, %v320_v62 }
  0xc0   :  { %v337_v3 = vmax.f32 %v333_v2, 0.0 }
  0xc2   :  { %v340_v4 = vpack.c.bf16 %v337_v3, %v337_v3 }
  0xc3   :  { %v321_v5 = vpop.f32.mrf.mxu2 }
  0xc4   :  { %v334_v6 = vpop.f32.mrf.mxu3  ;;  %490 = vmatmul.bf16.vlgmr.msrb.gmra.mxu1 %v340_v4 }
 0x139   :  { %v478_v7 = vpop.f32.mrf.mxu0 }
 0x141   :  { %v491_v8 = vpop.f32.mrf.mxu1  ;;  %v480_v10 = vpop.f32.mrf.mxu0 }
 0x142   :  { %v492_v9 = vadd.f32 %v491_v8, %v478_v7 }
 0x144   :  { %496 = vst [vmem:[#allocation10] sm:$0xff] %v492_v9 }
 0x145   :  { %507 = dma.vmem_to_hbm [thread:$0]  %s503_s3, 128, %s505_s13, [#allocation4]  }
 0x149   :  { %v493_v11 = vpop.f32.mrf.mxu1 }
 0x14a   :  { %892 = dma.done.wait [#allocation4], 128  }
 0x14b   :  { %893 = vsyncadd [#allocation4], 4294967168 }
 0x14c   :  { %512 = vsyncpa [#allocation3], 1 }
 0x14d   :  { %513 = vsyncpa [#allocation6], 1 }
 0x14e   :  { %514 = vsyncpa [#allocation9], 1 }
 0x14f   :  { %515 = vsyncpa [#allocation4], 1 }

</bundles_post_ra>
